<compile_context>
chip_gen: v6e
topology: v6e:2x2x1
jax: 0.10.0
libtpu: 0.0.40
codegen_flags: <defaults>
</compile_context>

<pallas_src>
import functools

import jax
import jax.numpy as jnp
from jax.experimental import pallas as pl
from jax.experimental.pallas import tpu as pltpu

BN_EPS = 1e-5
_ROW_TILE_MAX = 512              # rows (B*L) per grid step; 512-1024 ~ HBM roofline
_VMEM_LIMIT = 32 * 1024 * 1024   # scoped-VMEM limit; safe on v5e/v6e (128 MiB) and v7x (64 MiB)
_VMEM_BUDGET = 20 * 1024 * 1024  # target for blocks + temporaries when picking TR


def _round_up(x, m):
    return (x + m - 1) // m * m


def _pick_row_tile(n_rows, c_in, c_pad, n_groups, bpe):
    """Largest row tile (multiple of 8) such that (a) the grid has >= 2 steps
    (feeds both v7x TensorCores, keeps the pipeline overlapped) and (b)
    double-buffered blocks + in-kernel temporaries fit the VMEM budget
    (re-derived with v7x's 64 MiB physical VMEM in mind)."""
    tr = min(_ROW_TILE_MAX, _round_up(-(-n_rows // 2), 8))
    tr = max(tr, 8)

    def vmem_est(t):
        blocks = (2 * t * c_in * bpe                 # x tile (double-buffered)
                  + 2 * t * c_pad * 4                # output tile (double-buffered)
                  + 2 * c_in * n_groups * c_pad * bpe  # wcat
                  + 4 * 4 * c_pad)                   # scale/shift/stats blocks
        temps = (t + 8) * n_groups * c_pad * 4 + 3 * t * c_pad * 4
        return blocks + temps

    while tr > 8 and vmem_est(tr) > _VMEM_BUDGET:
        tr = _round_up(tr // 2, 8)
    return tr


# ---------- shared tile compute: stacked conv taps (+ optional 1x1 skip) -----
def _conv_tile(x_ref, halo_ref, w_ref, *, seq_len, c_pad):
    """Recompute the 3-tap conv (+ optional 1x1 skip) for the current row tile.

    Returns (y, skip): y[r] = sum_k x[r+k-1] @ w_tap_k with zero padding and
    batch boundaries respected; skip = x[r] @ w_skip iff w_ref carries a 4th
    column group, else None.  One MXU matmul covers tile rows + halo rows.
    """
    t = pl.program_id(0)
    tr = x_ref.shape[0]
    n_groups = w_ref.shape[1] // c_pad

    # Fold the halo rows (row 0 = previous global row, row 1 = next global
    # row) into the main matmul: a single (TR+8, Cin) @ (Cin, G*Cpad) dot.
    xh = jnp.concatenate([x_ref[...], halo_ref[0]], axis=0)
    pall = jnp.dot(xh, w_ref[...], preferred_element_type=jnp.float32)

    p = pall[:tr]                                   # tile rows
    h = pall[tr:tr + 2]                             # halo rows
    p0 = p[:, 0 * c_pad:1 * c_pad]                  # x[r] @ w_tap0 -> y[r+1]
    p1 = p[:, 1 * c_pad:2 * c_pad]                  # x[r] @ w_tap1 -> y[r]
    p2 = p[:, 2 * c_pad:3 * c_pad]                  # x[r] @ w_tap2 -> y[r-1]
    skip = p[:, 3 * c_pad:4 * c_pad] if n_groups == 4 else None
    hp = h[0:1, 0 * c_pad:1 * c_pad]                # x[t*TR-1]   @ w_tap0
    hn = h[1:2, 2 * c_pad:3 * c_pad]                # x[(t+1)*TR] @ w_tap2

    # Row shifts via the XLU (pltpu.roll) + one-row halo injection (VPU select)
    # instead of sublane concatenates that materialize full-tile copies.
    local = jax.lax.broadcasted_iota(jnp.int32, (tr, 1), 0)
    sd0 = jnp.where(local == 0, hp,
                    pltpu.roll(p0, shift=1, axis=0))        # sd0[r] = x[r-1]@tap0
    su2 = jnp.where(local == tr - 1, hn,
                    pltpu.roll(p2, shift=tr - 1, axis=0))    # su2[r] = x[r+1]@tap2

    # Zero cross-batch leakage at sequence boundaries.
    pos = (local + t * tr) % seq_len
    y = (p1
         + jnp.where(pos != 0, sd0, 0.0)
         + jnp.where(pos != seq_len - 1, su2, 0.0))
    return y, skip


# ---------- pass 1: BN partial stats only (no activation written to HBM) -----
def _stats_kernel(x_ref, halo_ref, w_ref, stats_ref, *, seq_len, n_rows, c_pad):
    t = pl.program_id(0)
    tr = x_ref.shape[0]
    y, _ = _conv_tile(x_ref, halo_ref, w_ref, seq_len=seq_len, c_pad=c_pad)

    # Per-tile mean-centred partial sums (parallel-Welford fold in the wrapper)
    # to avoid E[y^2] - E[y]^2 cancellation over large B*L.
    row = jax.lax.broadcasted_iota(jnp.int32, (tr, 1), 0) + t * tr
    valid = row < n_rows
    n_t = jnp.minimum(jnp.float32(tr), (n_rows - t * tr).astype(jnp.float32))

    yv = jnp.where(valid, y, 0.0)
    s1 = jnp.sum(yv, axis=0, keepdims=True)                 # (1, Cpad) sum(y)
    mean_t = s1 / n_t
    centred = jnp.where(valid, y - mean_t, 0.0)
    s2 = jnp.sum(centred * centred, axis=0, keepdims=True)  # (1, Cpad) M2_tile
    stats_ref[...] = jnp.concatenate([s1, s2], axis=0)[None]


# ---------- pass 2: recompute conv, fused BN + ReLU + skip add, dense store --
def _apply_kernel(x_ref, halo_ref, w_ref, scale_ref, shift_ref, o_ref,
                  *, seq_len, c_pad):
    y, skip = _conv_tile(x_ref, halo_ref, w_ref, seq_len=seq_len, c_pad=c_pad)
    out = jnp.maximum(y * scale_ref[...] + shift_ref[...], 0.0)
    # TODO(synk): dropout p>0 would draw its keep-mask here (pltpu.prng_*).
    if skip is None:                                 # identity skip (Cin == Cout)
        tr, c_in = x_ref.shape
        x32 = x_ref[...].astype(jnp.float32)
        if c_pad > c_in:
            x32 = jnp.concatenate(
                [x32, jnp.zeros((tr, c_pad - c_in), jnp.float32)], axis=1)
        out = out + x32
    else:
        out = out + skip
    o_ref[...] = out


@functools.partial(jax.jit, static_argnames=("compute_dtype",))
def cnn_encoder_layer(x_ncl, conv_w, skip_w, gamma, beta,
                      compute_dtype=jnp.float32):
    """x_ncl: (B, Cin, L) [PyTorch NCL layout]; conv_w: (Cout, Cin, 3);
       skip_w: (Cout, Cin) or None (identity skip, requires Cin == Cout);
       gamma/beta: (Cout,).  Returns (B, Cout, L).  dilation=1 only.
       compute_dtype=jnp.bfloat16 recommended on v6e/v7x for large channels."""
    B, Cin, L = x_ncl.shape
    Cout = conv_w.shape[0]
    has_skip_w = skip_w is not None
    n_groups = 4 if has_skip_w else 3

    R = B * L
    Cpad = _round_up(Cout, 128)
    bpe = jnp.dtype(compute_dtype).itemsize
    TR = _pick_row_tile(R, Cin, Cpad, n_groups, bpe)
    T = -(-R // TR)
    R_pad = T * TR

    # Channels-last rows, zero-padded to the tile grid (f32 master copy).
    x_rows = jnp.transpose(x_ncl, (0, 2, 1)).astype(jnp.float32).reshape(R, Cin)
    x_flat = jnp.pad(x_rows, ((0, R_pad - R), (0, 0)))

    # 1-row halos per tile (row 0: previous global row, row 1: next global row).
    tid = jnp.arange(T)
    prev_idx = tid * TR - 1
    next_idx = (tid + 1) * TR
    prev_rows = jnp.where((prev_idx >= 0)[:, None],
                          x_flat[jnp.clip(prev_idx, 0, R_pad - 1)], 0.0)
    next_rows = jnp.where((next_idx < R_pad)[:, None],
                          x_flat[jnp.clip(next_idx, 0, R_pad - 1)], 0.0)
    halo = jnp.zeros((T, 8, Cin), jnp.float32)
    halo = halo.at[:, 0, :].set(prev_rows).at[:, 1, :].set(next_rows)

    # Stacked weights [tap0 | tap1 | tap2 (| skip)], each group Cpad lanes wide.
    w_t = jnp.transpose(conv_w, (2, 1, 0)).astype(jnp.float32)       # (3, Cin, Cout)
    wcat = jnp.zeros((Cin, n_groups * Cpad), jnp.float32)
    for k in range(3):
        wcat = wcat.at[:, k * Cpad:k * Cpad + Cout].set(w_t[k])
    if has_skip_w:
        wcat = wcat.at[:, 3 * Cpad:3 * Cpad + Cout].set(
            jnp.transpose(skip_w, (1, 0)).astype(jnp.float32))

    x_c = x_flat.astype(compute_dtype)
    halo_c = halo.astype(compute_dtype)
    wcat_c = wcat.astype(compute_dtype)

    # ---- pass 1: per-tile BN partial stats (stats-only; conv taps, no skip) --
    stats = pl.pallas_call(
        functools.partial(_stats_kernel, seq_len=L, n_rows=R, c_pad=Cpad),
        out_shape=jax.ShapeDtypeStruct((T, 2, Cpad), jnp.float32),
        grid=(T,),
        in_specs=[
            pl.BlockSpec((TR, Cin), lambda t: (t, 0)),
            pl.BlockSpec((1, 8, Cin), lambda t: (t, 0, 0)),
            pl.BlockSpec((Cin, 3 * Cpad), lambda t: (0, 0)),   # conv taps only
        ],
        out_specs=pl.BlockSpec((1, 2, Cpad), lambda t: (t, 0, 0)),
        compiler_params=pltpu.CompilerParams(
            dimension_semantics=("parallel",),
            vmem_limit_bytes=_VMEM_LIMIT),
        cost_estimate=pl.CostEstimate(
            flops=2 * (R_pad + 8 * T) * Cin * 3 * Cpad,
            transcendentals=0,
            bytes_accessed=bpe * (R_pad * Cin + 8 * T * Cin + Cin * 3 * Cpad)
                           + 4 * T * 2 * Cpad),
    )(x_c, halo_c, wcat_c)

    # ---- fold per-tile stats (parallel Welford) into BN scale/shift ----------
    n_t = jnp.minimum(TR, R - jnp.arange(T) * TR).astype(jnp.float32)   # (T,)
    s1 = stats[:, 0, :]                                                 # (T, Cpad)
    m2 = stats[:, 1, :]
    mean_t = s1 / n_t[:, None]
    mean = jnp.sum(s1, axis=0) / R
    M2 = (jnp.sum(m2, axis=0)
          + jnp.sum(n_t[:, None] * (mean_t - mean[None, :]) ** 2, axis=0))
    var = jnp.maximum(M2 / R, 0.0)                   # biased variance (BN training)

    gamma_p = jnp.zeros((Cpad,), jnp.float32).at[:Cout].set(gamma.astype(jnp.float32))
    beta_p = jnp.zeros((Cpad,), jnp.float32).at[:Cout].set(beta.astype(jnp.float32))
    scale = (gamma_p * jax.lax.rsqrt(var + BN_EPS)).reshape(1, Cpad)
    shift = (beta_p - mean * scale[0]).reshape(1, Cpad)

    # ---- pass 2: recompute conv + skip, fused BN + ReLU + add, dense store ---
    out_pad = pl.pallas_call(
        functools.partial(_apply_kernel, seq_len=L, c_pad=Cpad),
        out_shape=jax.ShapeDtypeStruct((R_pad, Cpad), jnp.float32),
        grid=(T,),
        in_specs=[
            pl.BlockSpec((TR, Cin), lambda t: (t, 0)),
            pl.BlockSpec((1, 8, Cin), lambda t: (t, 0, 0)),
            pl.BlockSpec((Cin, n_groups * Cpad), lambda t: (0, 0)),
            pl.BlockSpec((1, Cpad), lambda t: (0, 0)),
            pl.BlockSpec((1, Cpad), lambda t: (0, 0)),
        ],
        out_specs=pl.BlockSpec((TR, Cpad), lambda t: (t, 0)),
        compiler_params=pltpu.CompilerParams(
            dimension_semantics=("parallel",),
            vmem_limit_bytes=_VMEM_LIMIT),
        cost_estimate=pl.CostEstimate(
            flops=2 * (R_pad + 8 * T) * Cin * n_groups * Cpad + 6 * R_pad * Cpad,
            transcendentals=0,
            bytes_accessed=bpe * (R_pad * Cin + 8 * T * Cin + Cin * n_groups * Cpad)
                           + 4 * (2 * Cpad + R_pad * Cpad)),
    )(x_c, halo_c, wcat_c, scale, shift)

    # TODO(synk): if the consumer accepts channels-last (B, L, Cout), drop this
    #             transpose (and with Cout % 128 == 0 the slice is rows-only)
    #             to save one wrapper HBM pass.
    out = out_pad[:R, :Cout].reshape(B, L, Cout)
    return jnp.transpose(out, (0, 2, 1)).astype(x_ncl.dtype)


def reference(x_ncl, conv_w, skip_w, gamma, beta):
    """Pure-JAX reference mirroring PyTorch semantics (training-mode BN)."""
    y = jax.lax.conv_general_dilated(
        x_ncl, conv_w, window_strides=(1,), padding=((1, 1),),
        dimension_numbers=("NCH", "OIH", "NCH"))
    mean = jnp.mean(y, axis=(0, 2), keepdims=True)
    var = jnp.mean((y - mean) ** 2, axis=(0, 2), keepdims=True)
    y = (y - mean) * jax.lax.rsqrt(var + BN_EPS)
    y = y * gamma.reshape(1, -1, 1) + beta.reshape(1, -1, 1)
    y = jnp.maximum(y, 0.0)
    if skip_w is None:
        skip = x_ncl
    else:
        skip = jax.lax.conv_general_dilated(
            x_ncl, skip_w[:, :, None], window_strides=(1,), padding=((0, 0),),
            dimension_numbers=("NCH", "OIH", "NCH"))
    return y + skip


if __name__ == "__main__":
    key = jax.random.PRNGKey(0)

    # --- case 1: Cin != Cout (1x1 conv on the skip path), f32 compute --------
    B, C_IN, C_OUT, L = 2, 16, 32, 24
    kx, kw, ks = jax.random.split(key, 3)
    x = jax.random.normal(kx, (B, C_IN, L), dtype=jnp.float32)
    bound = (6.0 / (C_IN * 3 + C_OUT * 3)) ** 0.5           # xavier_uniform
    conv_w = jax.random.uniform(kw, (C_OUT, C_IN, 3), jnp.float32, -bound, bound)
    sbound = (1.0 / C_IN) ** 0.5
    skip_w = jax.random.uniform(ks, (C_OUT, C_IN), jnp.float32, -sbound, sbound)
    gamma = jnp.ones((C_OUT,), jnp.float32)
    beta = jnp.zeros((C_OUT,), jnp.float32)

    out = jax.block_until_ready(cnn_encoder_layer(x, conv_w, skip_w, gamma, beta))
    ref = jax.block_until_ready(reference(x, conv_w, skip_w, gamma, beta))
    assert out.shape == (B, C_OUT, L), out.shape
    assert jnp.allclose(out, ref, atol=5e-4, rtol=5e-4), \
        float(jnp.max(jnp.abs(out - ref)))

    # --- case 2: Cin == Cout (identity skip, self.conv is None), f32 ---------
    kx2, kw2 = jax.random.split(jax.random.PRNGKey(1), 2)
    C = 16
    x2 = jax.random.normal(kx2, (B, C, L), dtype=jnp.float32)
    bound2 = (6.0 / (C * 3 + C * 3)) ** 0.5
    conv_w2 = jax.random.uniform(kw2, (C, C, 3), jnp.float32, -bound2, bound2)
    gamma2 = jnp.ones((C,), jnp.float32)
    beta2 = jnp.zeros((C,), jnp.float32)

    out2 = jax.block_until_ready(cnn_encoder_layer(x2, conv_w2, None, gamma2, beta2))
    ref2 = jax.block_until_ready(reference(x2, conv_w2, None, gamma2, beta2))
    assert out2.shape == (B, C, L), out2.shape
    assert jnp.allclose(out2, ref2, atol=5e-4, rtol=5e-4), \
        float(jnp.max(jnp.abs(out2 - ref2)))

    # --- case 3: bf16 MXU inputs (v6e/v7x fast path), loose tolerance --------
    out3 = jax.block_until_ready(
        cnn_encoder_layer(x, conv_w, skip_w, gamma, beta,
                          compute_dtype=jnp.bfloat16))
    err3 = float(jnp.max(jnp.abs(out3 - ref)))
    assert out3.shape == (B, C_OUT, L), out3.shape
    assert bool(jnp.all(jnp.isfinite(out3))) and err3 < 0.15, err3

    print("KERNEL_OK")
</pallas_src>

<mosaic_0001>
module attributes {stable_mosaic.version = 11 : i64} {
  func.func @_stats_kernel(%arg0: i32, %arg1: memref<24x16xf32, #tpu.memory_space<vmem>>, %arg2: memref<1x8x16xf32, #tpu.memory_space<vmem>>, %arg3: memref<16x384xf32, #tpu.memory_space<vmem>>, %arg4: memref<1x2x128xf32, #tpu.memory_space<vmem>>) attributes {dimension_semantics = [#tpu.dimension_semantics<parallel>], iteration_bounds = array<i64: 2>, scalar_prefetch = 0 : i64, scratch_operands = 0 : i64, tpu.core_type = #tpu.core_type<tc>, window_params = [{transform_indices = @transform_0, window_bounds = array<i64: 24, 16>}, {transform_indices = @transform_1, window_bounds = array<i64: 1, 8, 16>}, {transform_indices = @transform_2, window_bounds = array<i64: 16, 384>}, {transform_indices = @transform_3, window_bounds = array<i64: 1, 2, 128>}]} {
    %c0 = arith.constant 0 : index
    %c0_0 = arith.constant 0 : index
    %0 = vector.load %arg1[%c0, %c0_0] : memref<24x16xf32, #tpu.memory_space<vmem>>, vector<24x16xf32>
    %c0_1 = arith.constant 0 : index
    %c0_2 = arith.constant 0 : index
    %c0_3 = arith.constant 0 : index
    %1 = vector.load %arg2[%c0_1, %c0_2, %c0_3] : memref<1x8x16xf32, #tpu.memory_space<vmem>>, vector<1x8x16xf32>
    %2 = vector.shape_cast %1 : vector<1x8x16xf32> to vector<8x16xf32>
    %3 = tpu.concatenate %0, %2 in 0 : vector<24x16xf32>, vector<8x16xf32> -> vector<32x16xf32>
    %c0_4 = arith.constant 0 : index
    %c0_5 = arith.constant 0 : index
    %4 = vector.load %arg3[%c0_4, %c0_5] : memref<16x384xf32, #tpu.memory_space<vmem>>, vector<16x384xf32>
    %cst = arith.constant dense<0.000000e+00> : vector<32x384xf32>
    %5 = tpu.matmul %3, %4, %cst {dimension_numbers = #tpu.dot_dimension_numbers<[1], [0], [0], [1], [0, 0, 1, 1], [], []>} : vector<32x16xf32>, vector<16x384xf32>, vector<32x384xf32> -> vector<32x384xf32>
    %6 = vector.extract_strided_slice %5 {offsets = [0, 0], sizes = [24, 384], strides = [1, 1]} : vector<32x384xf32> to vector<24x384xf32>
    %7 = vector.extract_strided_slice %5 {offsets = [24, 0], sizes = [2, 384], strides = [1, 1]} : vector<32x384xf32> to vector<2x384xf32>
    %8 = vector.extract_strided_slice %6 {offsets = [0, 0], sizes = [24, 128], strides = [1, 1]} : vector<24x384xf32> to vector<24x128xf32>
    %9 = vector.extract_strided_slice %6 {offsets = [0, 128], sizes = [24, 128], strides = [1, 1]} : vector<24x384xf32> to vector<24x128xf32>
    %10 = vector.extract_strided_slice %6 {offsets = [0, 256], sizes = [24, 128], strides = [1, 1]} : vector<24x384xf32> to vector<24x128xf32>
    %11 = vector.extract_strided_slice %7 {offsets = [0, 0], sizes = [1, 128], strides = [1, 1]} : vector<2x384xf32> to vector<1x128xf32>
    %12 = vector.extract_strided_slice %7 {offsets = [1, 256], sizes = [1, 128], strides = [1, 1]} : vector<2x384xf32> to vector<1x128xf32>
    %13 = tpu.iota {dimensions = array<i32: 0>} : vector<24x1xi32>
    %c0_i32 = arith.constant 0 : i32
    %14 = vector.broadcast %c0_i32 : i32 to vector<24x1xi32>
    %15 = arith.cmpi eq, %13, %14 : vector<24x1xi32>
    %c1_i32 = arith.constant 1 : i32
    %16 = tpu.dynamic_rotate %8 by %c1_i32 dim 0 : vector<24x128xf32>, i32 -> vector<24x128xf32>
    %17 = vector.shape_cast %15 : vector<24x1xi1> to vector<24x1xi1>
    %18 = vector.broadcast %17 : vector<24x1xi1> to vector<24x128xi1>
    %19 = vector.shape_cast %11 : vector<1x128xf32> to vector<1x128xf32>
    %20 = vector.broadcast %19 : vector<1x128xf32> to vector<24x128xf32>
    %21 = arith.select %18, %20, %16 : vector<24x128xi1>, vector<24x128xf32>
    %c23_i32 = arith.constant 23 : i32
    %22 = vector.broadcast %c23_i32 : i32 to vector<24x1xi32>
    %23 = arith.cmpi eq, %13, %22 : vector<24x1xi32>
    %c23_i32_6 = arith.constant 23 : i32
    %24 = tpu.dynamic_rotate %10 by %c23_i32_6 dim 0 : vector<24x128xf32>, i32 -> vector<24x128xf32>
    %25 = vector.shape_cast %23 : vector<24x1xi1> to vector<24x1xi1>
    %26 = vector.broadcast %25 : vector<24x1xi1> to vector<24x128xi1>
    %27 = vector.shape_cast %12 : vector<1x128xf32> to vector<1x128xf32>
    %28 = vector.broadcast %27 : vector<1x128xf32> to vector<24x128xf32>
    %29 = arith.select %26, %28, %24 : vector<24x128xi1>, vector<24x128xf32>
    %c24_i32 = arith.constant 24 : i32
    %30 = arith.muli %arg0, %c24_i32 : i32
    %31 = vector.broadcast %30 : i32 to vector<24x1xi32>
    %32 = arith.addi %13, %31 : vector<24x1xi32>
    %c24_i32_7 = arith.constant 24 : i32
    %c0_i32_8 = arith.constant 0 : i32
    %33 = arith.cmpi eq, %c24_i32_7, %c0_i32_8 : i32
    %c1_i32_9 = arith.constant 1 : i32
    %34 = arith.select %33, %c1_i32_9, %c24_i32_7 : i32
    %35 = vector.broadcast %34 : i32 to vector<24x1xi32>
    %36 = arith.remsi %32, %35 : vector<24x1xi32>
    %c0_i32_10 = arith.constant 0 : i32
    %37 = vector.broadcast %c0_i32_10 : i32 to vector<24x1xi32>
    %38 = arith.cmpi ne, %36, %37 : vector<24x1xi32>
    %c0_i32_11 = arith.constant 0 : i32
    %39 = vector.broadcast %c0_i32_11 : i32 to vector<24x1xi32>
    %40 = arith.cmpi slt, %36, %39 : vector<24x1xi32>
    %c0_i32_12 = arith.constant 0 : i32
    %41 = arith.cmpi slt, %34, %c0_i32_12 : i32
    %42 = vector.broadcast %41 : i1 to vector<24x1xi1>
    %43 = vector.broadcast %42 : vector<24x1xi1> to vector<24x1xi1>
    %44 = arith.xori %40, %43 : vector<24x1xi1>
    %45 = arith.andi %44, %38 : vector<24x1xi1>
    %46 = vector.broadcast %34 : i32 to vector<24x1xi32>
    %47 = arith.addi %36, %46 : vector<24x1xi32>
    %48 = arith.select %45, %47, %36 : vector<24x1xi1>, vector<24x1xi32>
    %c0_i32_13 = arith.constant 0 : i32
    %49 = vector.broadcast %c0_i32_13 : i32 to vector<24x1xi32>
    %50 = arith.cmpi ne, %48, %49 : vector<24x1xi32>
    %cst_14 = arith.constant 0.000000e+00 : f32
    %51 = vector.shape_cast %50 : vector<24x1xi1> to vector<24x1xi1>
    %52 = vector.broadcast %51 : vector<24x1xi1> to vector<24x128xi1>
    %53 = vector.broadcast %cst_14 : f32 to vector<24x128xf32>
    %54 = arith.select %52, %21, %53 : vector<24x128xi1>, vector<24x128xf32>
    %55 = arith.addf %9, %54 : vector<24x128xf32>
    %c23_i32_15 = arith.constant 23 : i32
    %56 = vector.broadcast %c23_i32_15 : i32 to vector<24x1xi32>
    %57 = arith.cmpi ne, %48, %56 : vector<24x1xi32>
    %cst_16 = arith.constant 0.000000e+00 : f32
    %58 = vector.shape_cast %57 : vector<24x1xi1> to vector<24x1xi1>
    %59 = vector.broadcast %58 : vector<24x1xi1> to vector<24x128xi1>
    %60 = vector.broadcast %cst_16 : f32 to vector<24x128xf32>
    %61 = arith.select %59, %29, %60 : vector<24x128xi1>, vector<24x128xf32>
    %62 = arith.addf %55, %61 : vector<24x128xf32>
    %63 = tpu.iota {dimensions = array<i32: 0>} : vector<24x1xi32>
    %c24_i32_17 = arith.constant 24 : i32
    %64 = arith.muli %arg0, %c24_i32_17 : i32
    %65 = vector.broadcast %64 : i32 to vector<24x1xi32>
    %66 = arith.addi %63, %65 : vector<24x1xi32>
    %c48_i32 = arith.constant 48 : i32
    %67 = vector.broadcast %c48_i32 : i32 to vector<24x1xi32>
    %68 = arith.cmpi slt, %66, %67 : vector<24x1xi32>
    %c24_i32_18 = arith.constant 24 : i32
    %69 = arith.muli %arg0, %c24_i32_18 : i32
    %c48_i32_19 = arith.constant 48 : i32
    %70 = arith.subi %c48_i32_19, %69 : i32
    %71 = arith.sitofp %70 : i32 to f32
    %cst_20 = arith.constant 2.400000e+01 : f32
    %72 = arith.minimumf %cst_20, %71 : f32
    %cst_21 = arith.constant 0.000000e+00 : f32
    %73 = vector.shape_cast %68 : vector<24x1xi1> to vector<24x1xi1>
    %74 = vector.broadcast %73 : vector<24x1xi1> to vector<24x128xi1>
    %75 = vector.broadcast %cst_21 : f32 to vector<24x128xf32>
    %76 = arith.select %74, %62, %75 : vector<24x128xi1>, vector<24x128xf32>
    %cst_22 = arith.constant dense<0.000000e+00> : vector<128xf32>
    %77 = vector.multi_reduction <add>, %76, %cst_22 [0] : vector<24x128xf32> to vector<128xf32>
    %78 = vector.shape_cast %77 : vector<128xf32> to vector<1x128xf32>
    %79 = vector.broadcast %72 : f32 to vector<1x128xf32>
    %80 = arith.divf %78, %79 : vector<1x128xf32>
    %81 = vector.broadcast %80 : vector<1x128xf32> to vector<24x128xf32>
    %82 = arith.subf %62, %81 : vector<24x128xf32>
    %cst_23 = arith.constant 0.000000e+00 : f32
    %83 = vector.shape_cast %68 : vector<24x1xi1> to vector<24x1xi1>
    %84 = vector.broadcast %83 : vector<24x1xi1> to vector<24x128xi1>
    %85 = vector.broadcast %cst_23 : f32 to vector<24x128xf32>
    %86 = arith.select %84, %82, %85 : vector<24x128xi1>, vector<24x128xf32>
    %87 = arith.mulf %86, %86 : vector<24x128xf32>
    %cst_24 = arith.constant dense<0.000000e+00> : vector<128xf32>
    %88 = vector.multi_reduction <add>, %87, %cst_24 [0] : vector<24x128xf32> to vector<128xf32>
    %89 = vector.shape_cast %88 : vector<128xf32> to vector<1x128xf32>
    %90 = tpu.concatenate %78, %89 in 0 : vector<1x128xf32>, vector<1x128xf32> -> vector<2x128xf32>
    %91 = vector.shape_cast %90 : vector<2x128xf32> to vector<1x2x128xf32>
    %c0_25 = arith.constant 0 : index
    %c0_26 = arith.constant 0 : index
    %c0_27 = arith.constant 0 : index
    %92 = vector.load %arg4[%c0_25, %c0_26, %c0_27] : memref<1x2x128xf32, #tpu.memory_space<vmem>>, vector<1x2x128xf32>
    tpu.vector_store %arg4[%c0_25, %c0_26, %c0_27], %91 {strides = array<i32>} : memref<1x2x128xf32, #tpu.memory_space<vmem>>, vector<1x2x128xf32>,
    return
  }
  func.func @transform_0(%arg0: i32) -> (i32, i32) {
    %c0_i32 = arith.constant 0 : i32
    %c0_i32_0 = arith.constant 0 : i32
    return %arg0, %c0_i32 : i32, i32
  }
  func.func @transform_1(%arg0: i32) -> (i32, i32, i32) {
    %c0_i32 = arith.constant 0 : i32
    %c0_i32_0 = arith.constant 0 : i32
    %c0_i32_1 = arith.constant 0 : i32
    return %arg0, %c0_i32, %c0_i32_0 : i32, i32, i32
  }
  func.func @transform_2(%arg0: i32) -> (i32, i32) {
    %c0_i32 = arith.constant 0 : i32
    %c0_i32_0 = arith.constant 0 : i32
    %c0_i32_1 = arith.constant 0 : i32
    return %c0_i32, %c0_i32_0 : i32, i32
  }
  func.func @transform_3(%arg0: i32) -> (i32, i32, i32) {
    %c0_i32 = arith.constant 0 : i32
    %c0_i32_0 = arith.constant 0 : i32
    %c0_i32_1 = arith.constant 0 : i32
    return %arg0, %c0_i32, %c0_i32_0 : i32, i32, i32
  }
}

module attributes {stable_mosaic.version = 11 : i64} {
  func.func @_apply_kernel(%arg0: i32, %arg1: memref<24x16xf32, #tpu.memory_space<vmem>>, %arg2: memref<1x8x16xf32, #tpu.memory_space<vmem>>, %arg3: memref<16x512xf32, #tpu.memory_space<vmem>>, %arg4: memref<1x128xf32, #tpu.memory_space<vmem>>, %arg5: memref<1x128xf32, #tpu.memory_space<vmem>>, %arg6: memref<24x128xf32, #tpu.memory_space<vmem>>) attributes {dimension_semantics = [#tpu.dimension_semantics<parallel>], iteration_bounds = array<i64: 2>, scalar_prefetch = 0 : i64, scratch_operands = 0 : i64, tpu.core_type = #tpu.core_type<tc>, window_params = [{transform_indices = @transform_0, window_bounds = array<i64: 24, 16>}, {transform_indices = @transform_1, window_bounds = array<i64: 1, 8, 16>}, {pipeline_mode = #tpu.pipeline_mode<synchronous>, transform_indices = @transform_2, window_bounds = array<i64: 16, 512>}, {pipeline_mode = #tpu.pipeline_mode<synchronous>, transform_indices = @transform_3, window_bounds = array<i64: 1, 128>}, {pipeline_mode = #tpu.pipeline_mode<synchronous>, transform_indices = @transform_4, window_bounds = array<i64: 1, 128>}, {transform_indices = @transform_5, window_bounds = array<i64: 24, 128>}]} {
    %c0 = arith.constant 0 : index
    %c0_0 = arith.constant 0 : index
    %0 = vector.load %arg1[%c0, %c0_0] : memref<24x16xf32, #tpu.memory_space<vmem>>, vector<24x16xf32>
    %c0_1 = arith.constant 0 : index
    %c0_2 = arith.constant 0 : index
    %c0_3 = arith.constant 0 : index
    %1 = vector.load %arg2[%c0_1, %c0_2, %c0_3] : memref<1x8x16xf32, #tpu.memory_space<vmem>>, vector<1x8x16xf32>
    %2 = vector.shape_cast %1 : vector<1x8x16xf32> to vector<8x16xf32>
    %3 = tpu.concatenate %0, %2 in 0 : vector<24x16xf32>, vector<8x16xf32> -> vector<32x16xf32>
    %c0_4 = arith.constant 0 : index
    %c0_5 = arith.constant 0 : index
    %4 = vector.load %arg3[%c0_4, %c0_5] : memref<16x512xf32, #tpu.memory_space<vmem>>, vector<16x512xf32>
    %cst = arith.constant dense<0.000000e+00> : vector<32x512xf32>
    %5 = tpu.matmul %3, %4, %cst {dimension_numbers = #tpu.dot_dimension_numbers<[1], [0], [0], [1], [0, 0, 1, 1], [], []>} : vector<32x16xf32>, vector<16x512xf32>, vector<32x512xf32> -> vector<32x512xf32>
    %6 = vector.extract_strided_slice %5 {offsets = [0, 0], sizes = [24, 512], strides = [1, 1]} : vector<32x512xf32> to vector<24x512xf32>
    %7 = vector.extract_strided_slice %5 {offsets = [24, 0], sizes = [2, 512], strides = [1, 1]} : vector<32x512xf32> to vector<2x512xf32>
    %8 = vector.extract_strided_slice %6 {offsets = [0, 0], sizes = [24, 128], strides = [1, 1]} : vector<24x512xf32> to vector<24x128xf32>
    %9 = vector.extract_strided_slice %6 {offsets = [0, 128], sizes = [24, 128], strides = [1, 1]} : vector<24x512xf32> to vector<24x128xf32>
    %10 = vector.extract_strided_slice %6 {offsets = [0, 256], sizes = [24, 128], strides = [1, 1]} : vector<24x512xf32> to vector<24x128xf32>
    %11 = vector.extract_strided_slice %6 {offsets = [0, 384], sizes = [24, 128], strides = [1, 1]} : vector<24x512xf32> to vector<24x128xf32>
    %12 = vector.extract_strided_slice %7 {offsets = [0, 0], sizes = [1, 128], strides = [1, 1]} : vector<2x512xf32> to vector<1x128xf32>
    %13 = vector.extract_strided_slice %7 {offsets = [1, 256], sizes = [1, 128], strides = [1, 1]} : vector<2x512xf32> to vector<1x128xf32>
    %14 = tpu.iota {dimensions = array<i32: 0>} : vector<24x1xi32>
    %c0_i32 = arith.constant 0 : i32
    %15 = vector.broadcast %c0_i32 : i32 to vector<24x1xi32>
    %16 = arith.cmpi eq, %14, %15 : vector<24x1xi32>
    %c1_i32 = arith.constant 1 : i32
    %17 = tpu.dynamic_rotate %8 by %c1_i32 dim 0 : vector<24x128xf32>, i32 -> vector<24x128xf32>
    %18 = vector.shape_cast %16 : vector<24x1xi1> to vector<24x1xi1>
    %19 = vector.broadcast %18 : vector<24x1xi1> to vector<24x128xi1>
    %20 = vector.shape_cast %12 : vector<1x128xf32> to vector<1x128xf32>
    %21 = vector.broadcast %20 : vector<1x128xf32> to vector<24x128xf32>
    %22 = arith.select %19, %21, %17 : vector<24x128xi1>, vector<24x128xf32>
    %c23_i32 = arith.constant 23 : i32
    %23 = vector.broadcast %c23_i32 : i32 to vector<24x1xi32>
    %24 = arith.cmpi eq, %14, %23 : vector<24x1xi32>
    %c23_i32_6 = arith.constant 23 : i32
    %25 = tpu.dynamic_rotate %10 by %c23_i32_6 dim 0 : vector<24x128xf32>, i32 -> vector<24x128xf32>
    %26 = vector.shape_cast %24 : vector<24x1xi1> to vector<24x1xi1>
    %27 = vector.broadcast %26 : vector<24x1xi1> to vector<24x128xi1>
    %28 = vector.shape_cast %13 : vector<1x128xf32> to vector<1x128xf32>
    %29 = vector.broadcast %28 : vector<1x128xf32> to vector<24x128xf32>
    %30 = arith.select %27, %29, %25 : vector<24x128xi1>, vector<24x128xf32>
    %c24_i32 = arith.constant 24 : i32
    %31 = arith.muli %arg0, %c24_i32 : i32
    %32 = vector.broadcast %31 : i32 to vector<24x1xi32>
    %33 = arith.addi %14, %32 : vector<24x1xi32>
    %c24_i32_7 = arith.constant 24 : i32
    %c0_i32_8 = arith.constant 0 : i32
    %34 = arith.cmpi eq, %c24_i32_7, %c0_i32_8 : i32
    %c1_i32_9 = arith.constant 1 : i32
    %35 = arith.select %34, %c1_i32_9, %c24_i32_7 : i32
    %36 = vector.broadcast %35 : i32 to vector<24x1xi32>
    %37 = arith.remsi %33, %36 : vector<24x1xi32>
    %c0_i32_10 = arith.constant 0 : i32
    %38 = vector.broadcast %c0_i32_10 : i32 to vector<24x1xi32>
    %39 = arith.cmpi ne, %37, %38 : vector<24x1xi32>
    %c0_i32_11 = arith.constant 0 : i32
    %40 = vector.broadcast %c0_i32_11 : i32 to vector<24x1xi32>
    %41 = arith.cmpi slt, %37, %40 : vector<24x1xi32>
    %c0_i32_12 = arith.constant 0 : i32
    %42 = arith.cmpi slt, %35, %c0_i32_12 : i32
    %43 = vector.broadcast %42 : i1 to vector<24x1xi1>
    %44 = vector.broadcast %43 : vector<24x1xi1> to vector<24x1xi1>
    %45 = arith.xori %41, %44 : vector<24x1xi1>
    %46 = arith.andi %45, %39 : vector<24x1xi1>
    %47 = vector.broadcast %35 : i32 to vector<24x1xi32>
    %48 = arith.addi %37, %47 : vector<24x1xi32>
    %49 = arith.select %46, %48, %37 : vector<24x1xi1>, vector<24x1xi32>
    %c0_i32_13 = arith.constant 0 : i32
    %50 = vector.broadcast %c0_i32_13 : i32 to vector<24x1xi32>
    %51 = arith.cmpi ne, %49, %50 : vector<24x1xi32>
    %cst_14 = arith.constant 0.000000e+00 : f32
    %52 = vector.shape_cast %51 : vector<24x1xi1> to vector<24x1xi1>
    %53 = vector.broadcast %52 : vector<24x1xi1> to vector<24x128xi1>
    %54 = vector.broadcast %cst_14 : f32 to vector<24x128xf32>
    %55 = arith.select %53, %22, %54 : vector<24x128xi1>, vector<24x128xf32>
    %56 = arith.addf %9, %55 : vector<24x128xf32>
    %c23_i32_15 = arith.constant 23 : i32
    %57 = vector.broadcast %c23_i32_15 : i32 to vector<24x1xi32>
    %58 = arith.cmpi ne, %49, %57 : vector<24x1xi32>
    %cst_16 = arith.constant 0.000000e+00 : f32
    %59 = vector.shape_cast %58 : vector<24x1xi1> to vector<24x1xi1>
    %60 = vector.broadcast %59 : vector<24x1xi1> to vector<24x128xi1>
    %61 = vector.broadcast %cst_16 : f32 to vector<24x128xf32>
    %62 = arith.select %60, %30, %61 : vector<24x128xi1>, vector<24x128xf32>
    %63 = arith.addf %56, %62 : vector<24x128xf32>
    %c0_17 = arith.constant 0 : index
    %c0_18 = arith.constant 0 : index
    %64 = vector.load %arg4[%c0_17, %c0_18] : memref<1x128xf32, #tpu.memory_space<vmem>>, vector<1x128xf32>
    %65 = vector.broadcast %64 : vector<1x128xf32> to vector<24x128xf32>
    %66 = arith.mulf %63, %65 : vector<24x128xf32>
    %c0_19 = arith.constant 0 : index
    %c0_20 = arith.constant 0 : index
    %67 = vector.load %arg5[%c0_19, %c0_20] : memref<1x128xf32, #tpu.memory_space<vmem>>, vector<1x128xf32>
    %68 = vector.broadcast %67 : vector<1x128xf32> to vector<24x128xf32>
    %69 = arith.addf %66, %68 : vector<24x128xf32>
    %cst_21 = arith.constant 0.000000e+00 : f32
    %70 = vector.broadcast %cst_21 : f32 to vector<24x128xf32>
    %71 = arith.maximumf %69, %70 : vector<24x128xf32>
    %72 = arith.addf %71, %11 : vector<24x128xf32>
    %c0_22 = arith.constant 0 : index
    %c0_23 = arith.constant 0 : index
    %73 = vector.load %arg6[%c0_22, %c0_23] : memref<24x128xf32, #tpu.memory_space<vmem>>, vector<24x128xf32>
    tpu.vector_store %arg6[%c0_22, %c0_23], %72 {strides = array<i32>} : memref<24x128xf32, #tpu.memory_space<vmem>>, vector<24x128xf32>,
    return
  }
  func.func @transform_0(%arg0: i32) -> (i32, i32) {
    %c0_i32 = arith.constant 0 : i32
    %c0_i32_0 = arith.constant 0 : i32
    return %arg0, %c0_i32 : i32, i32
  }
  func.func @transform_1(%arg0: i32) -> (i32, i32, i32) {
    %c0_i32 = arith.constant 0 : i32
    %c0_i32_0 = arith.constant 0 : i32
    %c0_i32_1 = arith.constant 0 : i32
    return %arg0, %c0_i32, %c0_i32_0 : i32, i32, i32
  }
  func.func @transform_2(%arg0: i32) -> (i32, i32) {
    %c0_i32 = arith.constant 0 : i32
    %c0_i32_0 = arith.constant 0 : i32
    %c0_i32_1 = arith.constant 0 : i32
    return %c0_i32, %c0_i32_0 : i32, i32
  }
  func.func @transform_3(%arg0: i32) -> (i32, i32) {
    %c0_i32 = arith.constant 0 : i32
    %c0_i32_0 = arith.constant 0 : i32
    %c0_i32_1 = arith.constant 0 : i32
    return %c0_i32, %c0_i32_0 : i32, i32
  }
  func.func @transform_4(%arg0: i32) -> (i32, i32) {
    %c0_i32 = arith.constant 0 : i32
    %c0_i32_0 = arith.constant 0 : i32
    %c0_i32_1 = arith.constant 0 : i32
    return %c0_i32, %c0_i32_0 : i32, i32
  }
  func.func @transform_5(%arg0: i32) -> (i32, i32) {
    %c0_i32 = arith.constant 0 : i32
    %c0_i32_0 = arith.constant 0 : i32
    return %arg0, %c0_i32 : i32, i32
  }
}

</mosaic_0001>

<bundles_post_ra>
// kernel: cnn_encoder_layer.2
= control target key start
LH: loop header
LB: loop body
LE: loop exit
PB: predicated region body
PF: predicated region fallthrough
CT: control target
= control target key end

     0   :  { %s761_s12 = smov 0   ;;  %s904_s0 = inlined_call_operand.vmem [shape: f32[48,16], index: 0, kind: input, shape index: {}]   ;;  %s905_s1 = inlined_call_operand.vmem [shape: f32[2,8,16], index: 1, kind: input, shape index: {}]   ;;  %s906_s2 = inlined_call_operand.vmem [shape: f32[16,512], index: 2, kind: input, shape index: {}]   ;;  %s907_s3 = inlined_call_operand.vmem [shape: f32[2,2,128], index: 3, kind: output, shape index: {}]  }
   0x1 LB: > { %s767_s13 = sadd.s32 4294967295, %s737_s12   ;;  %p673_p0 = scmp.ge.s32.totalorder %s737_s12, 1  ;;  %s737_s12 = sphi %s761_s12, %s13_s12  }
   0x2   : > { %p117_p1 = scmp.lt.s32.totalorder %s737_s12, 3 }
   0x4   : > { %p771_p2 = pnand %p673_p0, %p117_p1 }
   0x5   : > { %p674_p3 = scmp.ne.s32.totalorder (!%p771_p2), %s767_s13, 0 }
   0x6   : > { %121 = sbr.rel (%p771_p2) target bundleno = 20 (0x14), region = 12 }
   0xb   : > { %125 = sbr.rel (%p674_p3) target bundleno = 20 (0x14), region = 16 }
  0x10   : > { %v138_v0 = vld [vmem:[%s906_s2] sm:$0xff]  ;;  %v140_v1 = vld [vmem:[%s906_s2 + $0x8] sm:$0xff]  ;;  %v142_v2 = vld [vmem:[%s906_s2 + $0x10] sm:$0xff] }
  0x11   : > { %139 = vst [vmem:[#allocation2 + $0x28] sm:$0xff] %v138_v0  ;;  %141 = vst [vmem:[#allocation2 + $0x10] sm:$0xff] %v140_v1  ;;  %v144_v3 = vld [vmem:[%s906_s2 + $0x20] sm:$0xff]  ;;  %v146_v4 = vld [vmem:[%s906_s2 + $0x28] sm:$0xff] }
  0x12   : > { %143 = vst [vmem:[#allocation2 + $0x8] sm:$0xff] %v142_v2  ;;  %v148_v5 = vld [vmem:[%s906_s2 + $0x30] sm:$0xff]  ;;  %145 = vst [vmem:[#allocation2] sm:$0xff] %v144_v3 }
  0x13   : > { %147 = vst [vmem:[#allocation2 + $0x18] sm:$0xff] %v146_v4  ;;  %149 = vst [vmem:[#allocation2 + $0x20] sm:$0xff] %v148_v5 }
  0x14 PF: > { %178 = sbr.rel (%p771_p2) target bundleno = 284 (0x11c), region = 51  ;;  %p210_p4 = scmp.lt.s32.totalorder (!%p771_p2), %s767_s13, 1 }
  0x15   : > { %s204_s27 = smul.u32 (!%p771_p2), 3, %s767_s13  ;;  %s740_s14 = smov (!%p771_p2), 24.0  }
  0x16   : > { %s464_s10 = smul.u32 (!%p771_p2), 24, %s767_s13 }
  0x17   : > { %p205_p5 = scmp.lt.s32.totalorder (!%p771_p2), %s204_s27, 5 }
  0x18   : > { %s862_s11 = ssub.s32 (!%p771_p2), 48, %s464_s10 }
  0x19   : > { %v225_v7 = vld [vmem:[#allocation2] sm:$0xff]  ;;  %v223_v8 = vld [vmem:[#allocation2 + $0x10] sm:$0xff]  ;;  %v222_v9 = vld [vmem:[#allocation2 + $0x28] sm:$0xff]  ;;  %s801_s28 = scalar_select %p210_p4, %s767_s13, 1  ;;  %v739_v11 = vmov 0.0   ;;  %vm228_vm0 = vcmask 130048   ;;  %v414_v17 = vlaneseq  ;;  %v465_v20 = vstv %s464_s10 }
  0x1a   : > { %v226_v6 = vld [vmem:[#allocation2 + $0x18] sm:$0xff]  ;;  %v227_v10 = vld [vmem:[#allocation2 + $0x20] sm:$0xff]  ;;  %323 = vmatprep.mubr.f32.mxu1 %v739_v11  ;;  %305 = vmatprep.mubr.f32.mxu0 %v739_v11  ;;  %s910_s27 = smov (!%p205_p5, %s204_s27), 5  ;;  %v224_v13 = vld [vmem:[#allocation2 + $0x8] sm:$0xff]  ;;  %s551_s13 = scvt.s32.f32 %s862_s11 }
  0x1b   : > { %709 = vmatprep.subr.mxu1 %v226_v6  ;;  %269 = vmatprep.subr.mxu0 %v226_v6  ;;  %s678_s29 = sshll.u32 %s801_s28, 3  ;;  %s677_s6 = sshll.u32 %s910_s27, 3  ;;  %v818_v18 = vshrl.u32 %v414_v17, 7 }
  0x1c   : > { %711 = vmatpush1.msra.mxu1 %v225_v7  ;;  %270 = vmatpush1.msra.mxu0 %v225_v7  ;;  %s213_s5 = scalar_lea.vmem %s905_s1, %s678_s29  ;;  %s208_s9 = scalar_lea.vmem %s904_s0, %s677_s6 }
  0x1d   : > { %710 = vmatprep.subr.mxu1 %v223_v8  ;;  %271 = vmatprep.subr.mxu0 %v223_v8  ;;  %v221_v12 = vld [vmem:[%s213_s5] sm:$0xff]  ;;  %v219_v15 = vld [vmem:[%s208_s9 + $0x8] sm:$0xff]  ;;  %v220_v16 = vld [vmem:[%s208_s9 + $0x10] sm:$0xff]  ;;  %v416_v19 = vadd.s32 8, %v818_v18  ;;  %v825_v21 = vadd.s32 16, %v818_v18  ;;  %v830_v23 = vadd.s32 %v465_v20, %v818_v18  ;;  %v459_v62 = vsub.s32 1, %v818_v18  ;;  %s552_s15 = smin.f32 %s740_s14, %s551_s13 }
  0x1e   : > { %712 = vmatpush1.msra.mxu1 %v222_v9  ;;  %272 = vmatpush1.msra.mxu0 %v222_v9  ;;  %v218_v14 = vld [vmem:[%s208_s9] sm:$0xff]  ;;  %vm424_vm13 = vcmp.lt.s32.totalorder %v818_v18, 1  ;;  %v436_v1 = vsub.s32 0, %v818_v18  ;;  %vm447_vm14 = vcmp.lt.s32.totalorder %v818_v18, 7  ;;  %s679_s16 = sshll.u32 %s801_s28, 1 }
  0x1f   : > { %699 = vmatprep.subr.mxu1 %v227_v10  ;;  %683 = vmatmul.mubr.msk.f32.vlgmr.msra.gmra.mxu1 %vm228_vm0, %v221_v12  ;;  %v827_v22 = vadd.s32 %v465_v20, %v416_v19  ;;  %v833_v24 = vadd.s32 %v465_v20, %v825_v21  ;;  %v470_v26 = vsub.s32 0, %v830_v23  ;;  %vm469_vm2 = vcmp.lt.s32.totalorder %v830_v23, 0  ;;  %s217_s19 = scalar_lea.vmem %s907_s3, %s679_s16 }
  0x20   : > { %700 = vmatpush3.msra.mxu1 %v227_v10  ;;  %680 = vmatmul.mubr.msk.f32.vlgmr.msra.gmra.mxu0 %vm228_vm0, %v218_v14 }
  0x21   : > { %701 = vmatprep.subr.mxu1 %v224_v13  ;;  %703 = vmatprep.mubr.msk.f32.mxu1 %vm228_vm0, %v218_v14  ;;  %v481_v25 = vsub.s32 0, %v827_v22  ;;  %v492_v27 = vsub.s32 0, %v833_v24  ;;  %v688_v29 = vmin.u32 %v470_v26, %v830_v23  ;;  %vm480_vm1 = vcmp.lt.s32.totalorder %v827_v22, 0 }
  0x22   : > { %702 = vmatpush3.msra.mxu1 %v224_v13  ;;  %311 = vmatprep.mubr.f32.mxu0 %v739_v11  ;;  %vm491_vm3 = vcmp.lt.s32.totalorder %v833_v24, 0 }
  0x23   : > { %704 = vmatmul.mubr.msk.f32.vlgmr.msra.gmra.mxu1 %vm228_vm0, %v219_v15  ;;  %v689_v28 = vmin.u32 %v481_v25, %v827_v22  ;;  %v690_v30 = vmin.u32 %v492_v27, %v833_v24  ;;  %v844_v33 = vmul.u32.u64.low 2863311531, %v688_v29  ;;  %v845_v34 = vmul.u32.u64.high 2863311531, %v688_v29, %v844_v33 }
  0x24   : > { %706 = vmatprep.mubr.msk.f32.mxu1 %vm228_vm0, %v220_v16  ;;  %681 = vmatmul.mubr.msk.f32.gmra.mxu0 %vm228_vm0, %v219_v15 }
  0x25   : > { %317 = vmatprep.mubr.f32.mxu0 %v739_v11  ;;  %v841_v31 = vmul.u32.u64.low 2863311531, %v689_v28  ;;  %v842_v32 = vmul.u32.u64.high 2863311531, %v689_v28, %v841_v31  ;;  %v847_v35 = vmul.u32.u64.low 2863311531, %v690_v30  ;;  %v848_v36 = vmul.u32.u64.high 2863311531, %v690_v30, %v847_v35 }
  0x26   : > { %v475_v38 = vshrl.u32 %v845_v34, 4 }
  0x27   : > { %707 = vmatmul.mubr.msk.f32.gmra.mxu1 %vm228_vm0, %v221_v12  ;;  %v486_v37 = vshrl.u32 %v842_v32, 4  ;;  %v497_v39 = vshrl.u32 %v848_v36, 4 }
  0x28   : > { %682 = vmatmul.mubr.msk.f32.gmra.mxu0 %vm228_vm0, %v220_v16  ;;  %v476_v41 = vmul.u32 24, %v475_v38 }
  0x29   : > { %v487_v40 = vmul.u32 24, %v486_v37  ;;  %v498_v42 = vmul.u32 24, %v497_v39  ;;  %v570_v39 = vstv %s552_s15 }
  0x2a   : > { %v477_v44 = vsub.s32 %v688_v29, %v476_v41  ;;  %729 = vrcp.f32 %v570_v39 }
  0x2b   : > { %v488_v43 = vsub.s32 %v689_v28, %v487_v40  ;;  %v499_v45 = vsub.s32 %v690_v30, %v498_v42 }
  0x2c   : > { %v478_v47 = vsub.s32 0, %v477_v44 }
  0x2d   : > { %v489_v46 = vsub.s32 0, %v488_v43  ;;  %v500_v48 = vsub.s32 0, %v499_v45 }
  0x2e   : > { %v479_v50 = vsel %vm469_vm2, %v478_v47, %v477_v44 }
  0x2f   : > { %v490_v49 = vsel %vm480_vm1, %v489_v46, %v488_v43  ;;  %v501_v52 = vsel %vm491_vm3, %v500_v48, %v499_v45  ;;  %vm502_vm6 = vcmp.ne.s32.totalorder %v479_v50, 0  ;;  %vm505_vm7 = vcmp.lt.s32.totalorder %v479_v50, 0 }
  0x30   : > { %vm503_vm4 = vcmp.ne.s32.totalorder %v490_v49, 0  ;;  %vm506_vm5 = vcmp.lt.s32.totalorder %v490_v49, 0  ;;  %v512_v54 = vadd.s32 24, %v490_v49  ;;  %v511_v56 = vadd.s32 24, %v479_v50  ;;  %vm508_vm11 = vmand %vm505_vm7, %vm502_vm6 }
  0x31   : > { %vm509_vm8 = vmand %vm506_vm5, %vm503_vm4  ;;  %vm504_vm9 = vcmp.ne.s32.totalorder %v501_v52, 0  ;;  %vm507_vm10 = vcmp.lt.s32.totalorder %v501_v52, 0  ;;  %v513_v59 = vadd.s32 24, %v501_v52  ;;  %vm443_vm3 = vcmp.eq.s32.totalorder %v825_v21, 23 }
  0x32   : > { %v515_v61 = vsel %vm509_vm8, %v512_v54, %v490_v49  ;;  %vm510_vm12 = vmand %vm507_vm10, %vm504_vm9  ;;  %v514_v0 = vsel %vm508_vm11, %v511_v56, %v479_v50  ;;  %vm418_vm4 = vcmp.eq.s32.totalorder %v818_v18, 0  ;;  %vm548_vm7 = vcmp.lt.s32.totalorder %v827_v22, 48 }
  0x33   : > { %vm517_vm15 = vcmp.ne.s32.totalorder %v514_v0, 0  ;;  %vm518_vm0 = vcmp.ne.s32.totalorder %v515_v61, 0  ;;  %v516_v6 = vsel %vm510_vm12, %v513_v59, %v501_v52  ;;  %vm532_vm1 = vcmp.ne.s32.totalorder %v514_v0, 23 }
  0x34   : > { %vm533_vm2 = vcmp.ne.s32.totalorder %v515_v61, 23  ;;  %vm519_vm5 = vcmp.ne.s32.totalorder %v516_v6, 0  ;;  %vm534_vm6 = vcmp.ne.s32.totalorder %v516_v6, 23  ;;  %vm547_vm8 = vcmp.lt.s32.totalorder %v830_v23, 48 }
  0x35   : > { %vm549_vm9 = vcmp.lt.s32.totalorder %v833_v24, 48  ;;  %vm590_vm10 = vcmask 1040384  }
  0x37   : > { %v730_v50 = vpop.eup %729 }
  0xdf   : > { %v325_v51 = vpop.f32.mrf.mxu1 }
  0xe0   : > { %v307_v55 = vpop.f32.mrf.mxu0  ;;  %v437_v16 = vrot.slane %v325_v51, %v436_v1 }
  0xe1   : > { %v327_v53 = vpop.f32.mrf.mxu1  ;;  %v421_v2 = vrot.slane %v307_v55, 7 }
  0xe2   : > { %v309_v58 = vpop.f32.mrf.mxu0 }
  0xe3   : > { %v705_v57 = vpop.f32.mrf.mxu1 }
  0xe4   : > { %v313_v63 = vpop.f32.mrf.mxu0  ;;  %v445_v10 = vrot.slane %v705_v57, 1 }
  0xe5   : > { %v395_v60 = vpop.f32.mrf.mxu1  ;;  %v422_v3 = vrot.slane %v313_v63, 7 }
  0xe6   : > { %v315_v5 = vpop.f32.mrf.mxu0  ;;  %v444_v11 = vrot.slane %v395_v60, 1 }
  0xe7   : > { %v708_v4 = vpop.f32.mrf.mxu1  ;;  %v426_v7 = vsel %vm424_vm13, %v421_v2, %v422_v3 }
  0xe8   : > { %v460_v8 = vrot.slane %v708_v4, %v459_v62  ;;  %v319_v12 = vpop.f32.mrf.mxu0  ;;  %v527_v14 = vsel %vm518_vm0, %v426_v7, 0.0  ;;  %v449_v27 = vsel %vm447_vm14, %v444_v11, %v445_v10 }
  0xe9   : > { %v405_v9 = vpop.f32.mrf.mxu1  ;;  %v423_v15 = vrot.slane %v319_v12, 7  ;;  %v530_v28 = vadd.f32 %v527_v14, %v315_v5  ;;  %v541_v37 = vsel %vm532_vm1, %v449_v27, 0.0 }
  0xea   : > { %v446_v13 = vrot.slane %v405_v9, 1  ;;  %v321_v30 = vpop.f32.mrf.mxu0 }
  0xeb   : > { %v427_v20 = vsel %vm424_vm13, %v423_v15, %v421_v2  ;;  %v425_v21 = vsel %vm424_vm13, %v422_v3, %v423_v15 }
  0xec   : > { %v448_v17 = vsel %vm447_vm14, %v445_v10, %v446_v13  ;;  %v450_v19 = vsel %vm447_vm14, %v446_v13, %v444_v11  ;;  %v438_v29 = vsel %vm418_vm4, %v437_v16, %v427_v20  ;;  %v528_v31 = vsel %vm519_vm5, %v425_v21, 0.0 }
  0xed   : > { %v542_v25 = vsel %vm533_vm2, %v448_v17, 0.0  ;;  %v463_v26 = vsel %vm443_vm3, %v460_v8, %v450_v19  ;;  %v526_v32 = vsel %vm517_vm15, %v438_v29, 0.0  ;;  %v531_v33 = vadd.f32 %v528_v31, %v321_v30 }
  0xee   : > { %v543_v34 = vsel %vm534_vm6, %v463_v26, 0.0  ;;  %v529_v35 = vadd.f32 %v526_v32, %v309_v58  ;;  %v545_v36 = vadd.f32 %v542_v25, %v530_v28 }
  0xef   : > { %v546_v38 = vadd.f32 %v543_v34, %v531_v33 }
  0xf0   : > { %v544_v18 = vadd.f32 %v541_v37, %v529_v35  ;;  %v560_v40 = vsel %vm548_vm7, %v545_v36, 0.0 }
  0xf1   : > { %v561_v43 = vsel %vm549_vm9, %v546_v38, 0.0 }
  0xf2   : > { %v559_v41 = vsel %vm547_vm8, %v544_v18, 0.0 }
  0xf3   : > { %v562_v42 = vadd.f32 %v560_v40, %v559_v41 }
  0xf5   : > { %v563_v44 = vadd.f32 %v562_v42, %v561_v43 }
  0xf7   : > { %v564_v45 = vrot.slane %v563_v44, 4 }
  0xf9   : > { %v565_v46 = vadd.f32 %v564_v45, %v563_v44 }
  0xfb   : > { %v566_v47 = vrot.slane %v565_v46, 2 }
  0xfd   : > { %v567_v48 = vadd.f32 %v566_v47, %v565_v46 }
  0xff   : > { %v568_v49 = vrot.slane %v567_v48, 1 }
 0x101   : > { %v569_v51 = vadd.f32 %v568_v49, %v567_v48 }
 0x103   : > { %v572_v52 = vmul.f32 %v730_v50, %v569_v51 }
 0x105   : > { %v573_v53 = vsub.f32 %v544_v18, %v572_v52  ;;  %v574_v54 = vsub.f32 %v545_v36, %v572_v52  ;;  %v575_v55 = vsub.f32 %v546_v38, %v572_v52 }
 0x107   : > { %v576_v56 = vsel %vm547_vm8, %v573_v53, 0.0  ;;  %v577_v57 = vsel %vm548_vm7, %v574_v54, 0.0  ;;  %v578_v58 = vsel %vm549_vm9, %v575_v55, 0.0 }
 0x108   : > { %v579_v59 = vmul.f32 %v576_v56, %v576_v56  ;;  %v580_v60 = vmul.f32 %v577_v57, %v577_v57  ;;  %v581_v61 = vmul.f32 %v578_v58, %v578_v58 }
 0x10a   : > { %v582_v62 = vadd.f32 %v580_v60, %v579_v59 }
 0x10c   : > { %v583_v63 = vadd.f32 %v582_v62, %v581_v61 }
 0x10e   : > { %v584_v0 = vrot.slane %v583_v63, 4 }
 0x110   : > { %v585_v1 = vadd.f32 %v584_v0, %v583_v63 }
 0x112   : > { %v586_v2 = vrot.slane %v585_v1, 2 }
 0x114   : > { %v587_v3 = vadd.f32 %v586_v2, %v585_v1 }
 0x116   : > { %v588_v4 = vrot.slane %v587_v3, 1 }
 0x118   : > { %v589_v22 = vadd.f32 %v588_v4, %v587_v3 }
 0x11a   : > { %v591_v23 = vsel %vm590_vm10, %v569_v51, %v589_v22 }
 0x11b   : > { %592 = vst [vmem:[%s217_s19] sm:$0x3] %v591_v23 }
 0x11c PF: > { %s13_s12 = sadd.s32 1, %s737_s12  }
 0x11d   : > { %p10_p6 = scmp.ge.s32.totalorder %s13_s12, 4  }
 0x11f   :  { %12 = sbr.rel (!%p10_p6) target bundleno = 1 (0x1), region = 92 }

// kernel: cnn_encoder_layer.3
= control target key start
LH: loop header
LB: loop body
LE: loop exit
PB: predicated region body
PF: predicated region fallthrough
CT: control target
= control target key end

     0   :  { %10 = vsyncpa [#allocation3], 0  ;;  %s1062_s0 = inlined_call_operand.vmem [shape: f32[48,16], index: 0, kind: input, shape index: {}]   ;;  %s1063_s1 = inlined_call_operand.vmem [shape: f32[2,8,16], index: 1, kind: input, shape index: {}]   ;;  %s1064_s2 = inlined_call_operand.vmem [shape: f32[16,512], index: 2, kind: input, shape index: {}]   ;;  %s1065_s3 = inlined_call_operand.vmem [shape: f32[1,128], index: 3, kind: input, shape index: {}]   ;;  %s1066_s4 = inlined_call_operand.vmem [shape: f32[1,128], index: 4, kind: input, shape index: {}]   ;;  %s1067_s5 = inlined_call_operand.hbm [shape: f32[48,128], index: 5, kind: output, shape index: {}]  }
   0x1   :  { %12 = vsyncpa [#allocation3 + $0x1], 0  ;;  %s862_s18 = smov 0   ;;  %s864_s19 = smov 0  }
   0x2   :  { %s866_s20 = smov 0   ;;  %s868_s21 = smov 0  }
   0x3 LB: > { %s883_s22 = sadd.s32 4294967295, %s826_s21   ;;  %s694_s23 = sadd.s32 4294967294, %s826_s21   ;;  %s826_s21 = sphi %s868_s21, %s1073_s21   ;;  %s822_s20 = sphi %s866_s20, %s1072_s20   ;;  %s818_s19 = sphi %s864_s19, %s1071_s19   ;;  %s814_s18 = sphi %s862_s18, %s1070_s18  }
   0x4   : > { %s887_s24 = sadd.s32 1, %s826_s21   ;;  %s140_s25 = sadd.s32 1, %s822_s20 }
   0x5   : > { %s137_s26 = ssub.s32 %s826_s21, %s887_s24  ;;  %p150_p0 = scmp.ne.s32.totalorder %s822_s20, %s818_s19 }
   0x6   : > { %p138_p1 = scmp.eq.s32.totalorder %s137_s26, 0  ;;  %p151_p2 = scmp.eq.s32.totalorder %s883_s22, 1 }
   0x7   : > { %p156_p3 = scmp.ne.s32.totalorder %s818_s19, %s814_s18  ;;  %p157_p4 = scmp.eq.s32.totalorder %s694_s23, 1 }
   0x8   : > { %s898_s27 = scalar_select %p138_p1, %s822_s20, %s140_s25  }
   0x9   : > { %p900_p5 = por %p151_p2, %p150_p0  ;;  %p904_p6 = por %p157_p4, %p156_p3 }
   0xa   : > { %p697_p7 = scmp.ge.s32.totalorder %s826_s21, 1  ;;  %p200_p8 = scmp.lt.s32.totalorder %s826_s21, 3 }
   0xc   : > { %p201_p9 = pnand %p697_p7, %p200_p8 }
   0xd   : > { %s232_s11 = smul.u32 (!%p201_p9), 3, %s883_s22  ;;  %p238_p11 = scmp.lt.s32.totalorder (!%p201_p9), %s883_s22, 1 }
   0xe   : > { %204 = sbr.rel (%p201_p9) target bundleno = 260 (0x104), region = 40  ;;  %s229_s23 = sand.u32 (!%p201_p9), 1, %s818_s19  }
   0xf   : > { %p233_p10 = scmp.lt.s32.totalorder (!%p201_p9), %s232_s11, 5  ;;  %s494_s15 = smul.u32 (!%p201_p9), 24, %s883_s22 }
  0x10   : > { %s717_s30 = smul.u32 (!%p201_p9), 24, %s229_s23  ;;  %s829_s13 = smov (!%p201_p9), [#allocation2]  }
  0x12   : > { %s231_s7 = scalar_lea.vmem (!%p201_p9), [#allocation2], %s717_s30 }
  0x13   : > { %v252_v0 = vld [vmem:[%s1064_s2 + $0x28] sm:$0xff]  ;;  %v254_v1 = vld [vmem:[%s1064_s2 + $0x38] sm:$0xff]  ;;  %v251_v2 = vld [vmem:[%s1064_s2 + $0x20] sm:$0xff]  ;;  %v828_v8 = vmov 0.0   ;;  %s1075_s11 = smov (!%p233_p10, %s232_s11), 5  ;;  %vm255_vm0 = vcmask 130048   ;;  %v444_v13 = vlaneseq  ;;  %v495_v16 = vstv %s494_s15 }
  0x14   : > { %296 = vmatprep.subr.mxu0 %v252_v0  ;;  %384 = vmatprep.subr.mxu1 %v254_v1  ;;  %v253_v3 = vld [vmem:[%s1064_s2 + $0x30] sm:$0xff]  ;;  %v248_v4 = vld [vmem:[%s1064_s2 + $0x8] sm:$0xff]  ;;  %v250_v5 = vld [vmem:[%s1064_s2 + $0x18] sm:$0xff]  ;;  %s698_s6 = sshll.u32 %s1075_s11, 3  ;;  %s620_s8 = sshll.u32 %s231_s7, 4  ;;  %s1017_s8 = int_to_ptr.vmem [resolvable:$true] %s620_s8 }
  0x15   : > { %297 = vmatpush1.msra.mxu0 %v251_v2  ;;  %385 = vmatpush1.msra.mxu1 %v253_v3  ;;  %v247_v6 = vld [vmem:[%s1064_s2] sm:$0xff]  ;;  %v249_v7 = vld [vmem:[%s1064_s2 + $0x10] sm:$0xff]  ;;  %s236_s9 = scalar_lea.vmem %s1062_s0, %s698_s6  ;;  %v951_v14 = vshrl.u32 %v444_v13, 7  ;;  %s716_s6 = smul.u32 384, %s883_s22 }
  0x16   : > { %298 = vmatprep.subr.mxu0 %v248_v4  ;;  %386 = vmatprep.subr.mxu1 %v250_v5  ;;  %v243_v9 = vld [vmem:[%s236_s9] sm:$0xff]  ;;  %s239_s10 = scalar_select %p238_p11, %s883_s22, 1  ;;  %v244_v10 = vld [vmem:[%s236_s9 + $0x8] sm:$0xff]  ;;  %v245_v11 = vld [vmem:[%s236_s9 + $0x10] sm:$0xff] }
  0x17   : > { %299 = vmatpush1.msra.mxu0 %v247_v6  ;;  %332 = vmatprep.mubr.f32.mxu0 %v828_v8  ;;  %v446_v15 = vadd.s32 8, %v951_v14  ;;  %v956_v18 = vadd.s32 16, %v951_v14  ;;  %v496_v21 = vadd.s32 %v495_v16, %v951_v14  ;;  %vm454_vm12 = vcmp.lt.s32.totalorder %v951_v14, 1  ;;  %s1022_s22 = scalar_lea.sflag [#allocation3], %s229_s23  ;;  %s766_s11 = scalar_lea.vmem %s1017_s8, 384 }
  0x18   : > { %387 = vmatpush1.msra.mxu1 %v249_v7  ;;  %420 = vmatprep.mubr.f32.mxu1 %v828_v8  ;;  %s699_s12 = sshll.u32 %s239_s10, 3  ;;  %v466_v3 = vsub.s32 0, %v951_v14  ;;  %v489_v4 = vsub.s32 1, %v951_v14  ;;  %p767_p12 = scmp.ne.s32.totalorder %s1017_s8, %s766_s11 }
  0x19   : > { %700 = vmatmul.mubr.msk.f32.vlgmr.msra.gmra.mxu0 %vm255_vm0, %v243_v9  ;;  %704 = vmatmul.mubr.msk.f32.vlgmr.msra.gmra.mxu1 %vm255_vm0, %v243_v9  ;;  %s241_s14 = scalar_lea.vmem %s1063_s1, %s699_s12  ;;  %v497_v17 = vadd.s32 %v495_v16, %v446_v15  ;;  %v498_v20 = vadd.s32 %v495_v16, %v956_v18  ;;  %v500_v24 = vsub.s32 0, %v496_v21  ;;  %vm499_vm5 = vcmp.lt.s32.totalorder %v496_v21, 0  ;;  %s1015_s12 = scalar_lea.hbm %s1067_s5, %s716_s6 }
  0x1a   : > { %338 = vmatprep.mubr.f32.mxu0 %v828_v8  ;;  %426 = vmatprep.mubr.f32.mxu1 %v828_v8  ;;  %v246_v12 = vld [vmem:[%s241_s14] sm:$0xff]  ;;  %p768_p13 = pnand %p767_p12, %p900_p5  ;;  %s770_s14 = sshll.u32 %s829_s13, 4  ;;  %s771_s14 = int_to_ptr.vmem [resolvable:$false] %s770_s14 }
  0x1b   : > { %v511_v19 = vsub.s32 0, %v497_v17  ;;  %v522_v23 = vsub.s32 0, %v498_v20  ;;  %v708_v28 = vmin.u32 %v500_v24, %v496_v21  ;;  %vm510_vm1 = vcmp.lt.s32.totalorder %v497_v17, 0  ;;  %s772_s15 = scalar_lea.vmem %s771_s14, 768  ;;  %p773_p1 = scmp.lt.s32.totalorder %s1017_s8, %s771_s14 }
  0x1c   : > { %vm521_vm2 = vcmp.lt.s32.totalorder %v498_v20, 0  ;;  %p769_p0 = pneg %p768_p13  ;;  %p774_p2 = scmp.lt.s32.totalorder %s772_s15, %s766_s11 }
  0x1d   : > { %701 = vmatmul.mubr.msk.f32.gmra.mxu0 %vm255_vm0, %v244_v10  ;;  %705 = vmatmul.mubr.msk.f32.gmra.mxu1 %vm255_vm0, %v244_v10  ;;  %v709_v22 = vmin.u32 %v511_v19, %v497_v17  ;;  %v710_v27 = vmin.u32 %v522_v23, %v498_v20  ;;  %v966_v31 = vmul.u32.u64.low 2863311531, %v708_v28  ;;  %v967_v32 = vmul.u32.u64.high 2863311531, %v708_v28, %v966_v31  ;;  %v711_v17 = vld [vmem:[%s1065_s3] ss:$0 sm:$0xff] }
  0x1e   : > { %344 = vmatprep.mubr.f32.mxu0 %v828_v8  ;;  %432 = vmatprep.mubr.f32.mxu1 %v828_v8  ;;  %p775_p3 = por %p774_p2, %p773_p1 }
  0x1f   : > { %v960_v25 = vmul.u32.u64.low 2863311531, %v709_v22  ;;  %v961_v26 = vmul.u32.u64.high 2863311531, %v709_v22, %v960_v25  ;;  %v963_v29 = vmul.u32.u64.low 2863311531, %v710_v27  ;;  %v964_v30 = vmul.u32.u64.high 2863311531, %v710_v27, %v963_v29 }
  0x20   : > { %v505_v36 = vshrl.u32 %v967_v32, 4  ;;  %p776_p4 = pnand %p775_p3, %p769_p0 }
  0x21   : > { %702 = vmatmul.mubr.msk.f32.gmra.mxu0 %vm255_vm0, %v245_v11  ;;  %706 = vmatmul.mubr.msk.f32.gmra.mxu1 %vm255_vm0, %v245_v11  ;;  %v516_v33 = vshrl.u32 %v961_v26, 4  ;;  %v527_v35 = vshrl.u32 %v964_v30, 4 }
  0x22   : > { %350 = vmatprep.mubr.f32.mxu0 %v828_v8  ;;  %438 = vmatprep.mubr.f32.mxu1 %v828_v8  ;;  %v506_v39 = vmul.u32 24, %v505_v36 }
  0x23   : > { %v517_v34 = vmul.u32 24, %v516_v33  ;;  %v528_v38 = vmul.u32 24, %v527_v35 }
  0x24   : > { %v507_v42 = vsub.s32 %v708_v28, %v506_v39  ;;  %v712_v28 = vld [vmem:[%s1066_s4] ss:$0 sm:$0xff] }
  0x25   : > { %703 = vmatmul.mubr.msk.f32.gmra.mxu0 %vm255_vm0, %v246_v12  ;;  %707 = vmatmul.mubr.msk.f32.gmra.mxu1 %vm255_vm0, %v246_v12  ;;  %v518_v37 = vsub.s32 %v709_v22, %v517_v34  ;;  %v529_v41 = vsub.s32 %v710_v27, %v528_v38 }
  0x26   : > { %v508_v45 = vsub.s32 0, %v507_v42 }
  0x27   : > { %v519_v40 = vsub.s32 0, %v518_v37  ;;  %v530_v44 = vsub.s32 0, %v529_v41 }
  0x28   : > { %v509_v50 = vsel %vm499_vm5, %v508_v45, %v507_v42 }
  0x29   : > { %v520_v43 = vsel %vm510_vm1, %v519_v40, %v518_v37  ;;  %v531_v46 = vsel %vm521_vm2, %v530_v44, %v529_v41  ;;  %vm532_vm10 = vcmp.ne.s32.totalorder %v509_v50, 0  ;;  %vm535_vm11 = vcmp.lt.s32.totalorder %v509_v50, 0 }
  0x2a   : > { %vm533_vm3 = vcmp.ne.s32.totalorder %v520_v43, 0  ;;  %vm536_vm4 = vcmp.lt.s32.totalorder %v520_v43, 0  ;;  %v542_v47 = vadd.s32 24, %v520_v43  ;;  %vm534_vm7 = vcmp.ne.s32.totalorder %v531_v46, 0  ;;  %vm538_vm14 = vmand %vm535_vm11, %vm532_vm10 }
  0x2b   : > { %vm539_vm6 = vmand %vm536_vm4, %vm533_vm3  ;;  %vm537_vm8 = vcmp.lt.s32.totalorder %v531_v46, 0  ;;  %v543_v54 = vadd.s32 24, %v531_v46  ;;  %v541_v59 = vadd.s32 24, %v509_v50  ;;  %vm477_vm1 = vcmp.lt.s32.totalorder %v951_v14, 7 }
  0x2c   : > { %v545_v53 = vsel %vm539_vm6, %v542_v47, %v520_v43  ;;  %vm540_vm9 = vmand %vm537_vm8, %vm534_vm7  ;;  %vm448_vm2 = vcmp.eq.s32.totalorder %v951_v14, 0  ;;  %vm473_vm3 = vcmp.eq.s32.totalorder %v956_v18, 23 }
  0x2d   : > { %vm548_vm13 = vcmp.ne.s32.totalorder %v545_v53, 0  ;;  %v546_v62 = vsel %vm540_vm9, %v543_v54, %v531_v46  ;;  %vm563_vm15 = vcmp.ne.s32.totalorder %v545_v53, 23  ;;  %v544_v8 = vsel %vm538_vm14, %v541_v59, %v509_v50 }
  0x2e   : > { %vm549_vm0 = vcmp.ne.s32.totalorder %v546_v62, 0  ;;  %vm564_vm4 = vcmp.ne.s32.totalorder %v546_v62, 23  ;;  %vm547_vm5 = vcmp.ne.s32.totalorder %v544_v8, 0  ;;  %vm562_vm6 = vcmp.ne.s32.totalorder %v544_v8, 23 }
  0xd9   : > { %v334_v48 = vpop.f32.mrf.mxu0  ;;  %v422_v49 = vpop.f32.mrf.mxu1 }
  0xda   : > { %v451_v57 = vrot.slane %v334_v48, 7  ;;  %v474_v15 = vrot.slane %v422_v49, 1 }
  0xdb   : > { %v972_v51 = vpop.f32.mrf.mxu0  ;;  %v974_v52 = vpop.f32.mrf.mxu1 }
  0xdd   : > { %v340_v55 = vpop.f32.mrf.mxu0  ;;  %v428_v56 = vpop.f32.mrf.mxu1 }
  0xde   : > { %v452_v58 = vrot.slane %v340_v55, 7  ;;  %v475_v5 = vrot.slane %v428_v56, 1 }
  0xdf   : > { %v342_v60 = vpop.f32.mrf.mxu0  ;;  %v430_v61 = vpop.f32.mrf.mxu1 }
  0xe0   : > { %v456_v63 = vsel %vm454_vm12, %v451_v57, %v452_v58  ;;  %v479_v25 = vsel %vm477_vm1, %v474_v15, %v475_v5 }
  0xe1   : > { %v557_v0 = vsel %vm548_vm13, %v456_v63, 0.0  ;;  %v346_v1 = vpop.f32.mrf.mxu0  ;;  %v434_v2 = vpop.f32.mrf.mxu1  ;;  %v571_v40 = vsel %vm562_vm6, %v479_v25, 0.0 }
  0xe2   : > { %v453_v6 = vrot.slane %v346_v1, 7  ;;  %v476_v7 = vrot.slane %v434_v2, 1  ;;  %v560_v11 = vadd.f32 %v557_v0, %v342_v60 }
  0xe3   : > { %v348_v9 = vpop.f32.mrf.mxu0  ;;  %v436_v10 = vpop.f32.mrf.mxu1 }
  0xe4   : > { %v478_v12 = vsel %vm477_vm1, %v475_v5, %v476_v7  ;;  %v455_v13 = vsel %vm454_vm12, %v452_v58, %v453_v6  ;;  %v457_v26 = vsel %vm454_vm12, %v453_v6, %v451_v57  ;;  %v480_v27 = vsel %vm477_vm1, %v476_v7, %v474_v15 }
  0xe5   : > { %v572_v16 = vsel %vm563_vm15, %v478_v12, 0.0  ;;  %v558_v19 = vsel %vm549_vm0, %v455_v13, 0.0  ;;  %v352_v20 = vpop.f32.mrf.mxu0  ;;  %v440_v21 = vpop.f32.mrf.mxu1 }
  0xe6   : > { %v575_v22 = vadd.f32 %v572_v16, %v560_v11  ;;  %v467_v23 = vrot.slane %v352_v20, %v466_v3  ;;  %v490_v24 = vrot.slane %v440_v21, %v489_v4  ;;  %v561_v32 = vadd.f32 %v558_v19, %v348_v9 }
  0xe7   : > { %v354_v29 = vpop.f32.mrf.mxu0  ;;  %v442_v30 = vpop.f32.mrf.mxu1 }
  0xe8   : > { %v585_v31 = vmul.f32 %v711_v17, %v575_v22  ;;  %v468_v33 = vsel %vm448_vm2, %v467_v23, %v457_v26  ;;  %v493_v34 = vsel %vm473_vm3, %v490_v24, %v480_v27 }
  0xe9   : > { %v556_v35 = vsel %vm547_vm5, %v468_v33, 0.0  ;;  %v573_v36 = vsel %vm564_vm4, %v493_v34, 0.0 }
  0xea   : > { %v595_v37 = vadd.f32 %v712_v28, %v585_v31  ;;  %v559_v38 = vadd.f32 %v556_v35, %v972_v51  ;;  %v576_v39 = vadd.f32 %v573_v36, %v561_v32 }
  0xec   : > { %v598_v41 = vmax.f32 %v595_v37, 0.0  ;;  %v574_v42 = vadd.f32 %v571_v40, %v559_v38  ;;  %v586_v43 = vmul.f32 %v711_v17, %v576_v39 }
  0xee   : > { %v601_v14 = vadd.f32 %v598_v41, %v430_v61  ;;  %v584_v44 = vmul.f32 %v711_v17, %v574_v42  ;;  %v596_v45 = vadd.f32 %v712_v28, %v586_v43 }
  0xf0   : > { %v594_v18 = vadd.f32 %v712_v28, %v584_v44  ;;  %v599_v46 = vmax.f32 %v596_v45, 0.0  ;;  %604 = vst [vmem:[%s231_s7 + $0x8] sm:$0xff] %v601_v14 }
  0xf2   : > { %v597_v47 = vmax.f32 %v594_v18, 0.0  ;;  %v602_v48 = vadd.f32 %v599_v46, %v436_v10 }
  0xf4   : > { %v600_v49 = vadd.f32 %v597_v47, %v974_v52  ;;  %605 = vst [vmem:[%s231_s7 + $0x10] sm:$0xff] %v602_v48 }
  0xf6   : > { %603 = vst [vmem:[%s231_s7] sm:$0xff] %v600_v49 }
  0xf7   : > { %779 = shalt.err (!%p776_p4)
}
  0xf8   : > { %s780_s16 = scalar_lea.hbm %s1015_s12, 384  ;;  %s784_s25 = scalar_lea.hbm %s1067_s5, 768 }
  0xf9   : > { %p781_p7 = scmp.ne.s32.totalorder %s1015_s12, %s780_s16  ;;  %p785_p10 = scmp.lt.s32.totalorder %s1015_s12, %s1067_s5 }
  0xfa   : > { %p786_p11 = scmp.lt.s32.totalorder %s784_s25, %s780_s16 }
  0xfb   : > { %p782_p8 = pnand %p781_p7, %p900_p5 }
  0xfc   : > { %p787_p12 = por %p786_p11, %p785_p10 }
  0xfd   : > { %p783_p9 = pneg %p782_p8 }
  0xff   : > { %p788_p13 = pnand %p787_p12, %p783_p9 }
 0x101   : > { %791 = shalt.err (!%p788_p13)
}
 0x102   : > { %s830_s6 = smov 128   ;;  %s831_s7 = smov 8  }
 0x103   : > { %724 = dma.vmem_to_hbm [thread:$0]  (%p900_p5), %s1017_s8, 384, %s1015_s12, %s1022_s22, %s830_s6, %s830_s6, %s831_s7  }
 0x104 PF: > { %p730_p0 = scmp.ge.s32.totalorder %s826_s21, 2  ;;  %s635_s9 = sand.u32 1, %s814_s18  }
 0x105   : > { %s636_s10 = scalar_lea.sflag [#allocation3], %s635_s9 }
 0x106   : > { %p727_p1 = pnand %p730_p0, %p904_p6 }
 0x108   : > { %p728_p2 = pneg %p727_p1 }
 0x10a   : > { %809 = dma.done.wait (%p728_p2), %s636_s10, 384  }
 0x10b   : > { %811 = vsyncadd (%p728_p2), %s636_s10, 4294966912  ;;  %p15_p3 = scmp.ge.s32.totalorder %s887_s24, 4   ;;  %s1070_s18 = smov %s818_s19 }
 0x10c   : > { %s1071_s19 = smov %s822_s20  ;;  %s1072_s20 = smov %s898_s27 }
 0x10d   : > { %s1073_s21 = smov %s887_s24  ;;  %17 = sbr.rel (!%p15_p3) target bundleno = 3 (0x3), region = 78 }
 0x112   :  { %641 = vsyncpa [#allocation3], 1 }
 0x113   :  { %643 = vsyncpa [#allocation3 + $0x1], 1 }

</bundles_post_ra>
